<compile_context>
chip_gen: v7x
topology: tpu7x:2x2x1
jax: 0.10.0
libtpu: 0.0.40
codegen_flags: <defaults>
</compile_context>

<pallas_src>
import functools

import jax
import jax.numpy as jnp
from jax.experimental import pallas as pl
from jax.experimental.pallas import tpu as pltpu

_EPS = 1e-5
_NEG_BIG = -1e9
_VMEM_CAP = None


# ------------------------------------------------------------------
# VMEM budget (generation aware) and tiling helpers
# ------------------------------------------------------------------
def _vmem_cap_bytes():
    global _VMEM_CAP
    if _VMEM_CAP is None:
        try:
            _VMEM_CAP = int(0.75 * pltpu.get_tpu_info().vmem_capacity_bytes)
        except Exception:
            _VMEM_CAP = 48 << 20          # safe on v7x (64 MiB / TensorCore)
    return _VMEM_CAP


def _vmem_limit(block_bytes):
    return int(min(max(2 * block_bytes + (8 << 20), 16 << 20),
                   _vmem_cap_bytes()))


def _pick_q_tile(n, cap=256):
    """Largest divisor of n that is a multiple of 8 and <= cap, else n."""
    if n <= cap:
        return n
    t = (cap // 8) * 8
    while t >= 8:
        if n % t == 0:
            return t
        t -= 8
    return n


def _pick_kv_tile(n, cap=1024):
    """KV tile: full length if small, else a multiple-of-128 divisor."""
    if n <= cap:
        return n
    t = (cap // 128) * 128
    while t >= 128:
        if n % t == 0:
            return t
        t -= 128
    return n


# ------------------------------------------------------------------
# Projection kernel: (optional LayerNorm) + one wide bf16 MXU matmul.
# Used for Q and for the stacked [K|V] projection (all heads at once).
# ------------------------------------------------------------------
def _proj_kernel(x_ref, g_ref, b_ref, w_ref, o_ref, *, apply_ln, eps, scale):
    x = x_ref[...].astype(jnp.float32)
    if apply_ln:
        mu = jnp.mean(x, axis=-1, keepdims=True)
        xc = x - mu                                   # two-pass LN (precision)
        var = jnp.mean(xc * xc, axis=-1, keepdims=True)
        x = xc * jax.lax.rsqrt(var + eps) * g_ref[...] + b_ref[...]
    acc = jnp.dot(x.astype(jnp.bfloat16), w_ref[...],
                  preferred_element_type=jnp.float32)
    if scale != 1.0:
        acc = acc * scale                             # 1/sqrt(hd) kept in f32
    o_ref[...] = acc.astype(o_ref.dtype)


def _project(x2d, gamma, beta, w_b, *, apply_ln, scale, row_cap=512):
    n, din = x2d.shape
    nout = w_b.shape[1]
    tm = _pick_q_tile(n, cap=row_cap)
    kernel = functools.partial(_proj_kernel, apply_ln=apply_ln, eps=_EPS,
                               scale=scale)
    blk = 2 * (tm * din * x2d.dtype.itemsize + tm * nout * 2) \
        + 2 * (din * nout * 2 + 2 * din * 4) + tm * nout * 4
    return pl.pallas_call(
        kernel,
        out_shape=jax.ShapeDtypeStruct((n, nout), jnp.bfloat16),
        grid=(n // tm,),
        in_specs=[pl.BlockSpec((tm, din), lambda i: (i, 0)),
                  pl.BlockSpec((1, din), lambda i: (0, 0)),
                  pl.BlockSpec((1, din), lambda i: (0, 0)),
                  pl.BlockSpec((din, nout), lambda i: (0, 0))],
        out_specs=pl.BlockSpec((tm, nout), lambda i: (i, 0)),
        compiler_params=pltpu.CompilerParams(
            dimension_semantics=("parallel",),
            vmem_limit_bytes=_vmem_limit(blk)),
    )(x2d, gamma, beta, w_b)


# ------------------------------------------------------------------
# encoder_hid_proj Linear (bias, dtype preserving), row-tiled
# ------------------------------------------------------------------
def _linear_kernel(x_ref, w_ref, b_ref, o_ref):
    acc = jnp.dot(x_ref[...].astype(jnp.bfloat16), w_ref[...],
                  preferred_element_type=jnp.float32)
    o_ref[...] = (acc + b_ref[...]).astype(o_ref.dtype)


def linear_pallas(x2d, w, b, *, row_cap=512):
    n, din = x2d.shape
    dout = w.shape[1]
    tm = _pick_q_tile(n, cap=row_cap)
    w_b = w.astype(jnp.bfloat16)
    b2 = b.reshape(1, dout).astype(jnp.float32)
    blk = 2 * (tm * din * x2d.dtype.itemsize + tm * dout * 4) \
        + 2 * (din * dout * 2 + dout * 4)
    return pl.pallas_call(
        _linear_kernel,
        out_shape=jax.ShapeDtypeStruct((n, dout), x2d.dtype),
        grid=(n // tm,),
        in_specs=[pl.BlockSpec((tm, din), lambda i: (i, 0)),
                  pl.BlockSpec((din, dout), lambda i: (0, 0)),
                  pl.BlockSpec((1, dout), lambda i: (0, 0))],
        out_specs=pl.BlockSpec((tm, dout), lambda i: (i, 0)),
        compiler_params=pltpu.CompilerParams(
            dimension_semantics=("parallel",),
            vmem_limit_bytes=_vmem_limit(blk)),
    )(x2d, w_b, b2)


# ------------------------------------------------------------------
# Flash-style attention kernel.
# Grid: (B, L//TQ, Lk//TK) -- kv axis is the reduction ("arbitrary") axis.
# Inputs are pre-projected, head-major bf16 Q / KV; the fused out-proj runs
# once per q tile in finalize as a single wide matmul.
# ------------------------------------------------------------------
def _attn_kernel(pm_ref, q_ref, kv_ref, mask_ref, x_ref, wf_ref, bf_ref,
                 out_ref, m_sc, l_sc, acc_sc, *, heads, head_dim):
    b = pl.program_id(0)
    ki = pl.program_id(2)
    n_kv = pl.num_programs(2)
    pm = pm_ref[b]                                   # int32 0/1

    @pl.when(ki == 0)
    def _init():
        m_sc[...] = jnp.full_like(m_sc, -1e30)
        l_sc[...] = jnp.zeros_like(l_sc)
        acc_sc[...] = jnp.zeros_like(acc_sc)

    @pl.when(pm != 0)                                # skip all work when gated
    def _compute():
        bias = mask_ref[0].astype(jnp.float32)       # (TQ, TK), once per step
        # TODO(synk): for heads >= 8 switch to lax.fori_loop(unroll=2) with
        # dynamic first-axis indexing to bound vreg pressure.
        for h in range(heads):                       # static unroll over heads
            q_h = q_ref[0, h]                        # (TQ, hd) bf16
            k_h = kv_ref[0, h]                       # (TK, hd) bf16
            v_h = kv_ref[0, heads + h]               # (TK, hd) bf16
            s = jax.lax.dot_general(q_h, k_h, (((1,), (1,)), ((), ())),
                                    preferred_element_type=jnp.float32)
            s = s + bias
            m_prev = m_sc[h]                         # (TQ, 1)
            m_new = jnp.maximum(m_prev, jnp.max(s, axis=-1, keepdims=True))
            alpha = jnp.exp(m_prev - m_new)
            p = jnp.exp(s - m_new)
            l_sc[h] = alpha * l_sc[h] + jnp.sum(p, axis=-1, keepdims=True)
            acc_sc[h] = alpha * acc_sc[h] + jnp.dot(
                p.astype(jnp.bfloat16), v_h, preferred_element_type=jnp.float32)
            m_sc[h] = m_new

    @pl.when(ki == n_kv - 1)
    def _finalize():
        x = x_ref[0]                                 # (TQ, D) residual

        @pl.when(pm != 0)
        def _with_attn():
            parts = []
            for h in range(heads):
                inv = pl.reciprocal(jnp.maximum(l_sc[h], 1e-30), approx=True)
                parts.append((acc_sc[h] * inv).astype(jnp.bfloat16))
            ctx = jnp.concatenate(parts, axis=-1)    # (TQ, inner) bf16
            y = jnp.dot(ctx, wf_ref[...],
                        preferred_element_type=jnp.float32) + bf_ref[...]
            out_ref[0] = (x.astype(jnp.float32) + y).astype(out_ref.dtype)

        @pl.when(pm == 0)
        def _passthrough():
            out_ref[0] = x


def _run_fused_attention(params, hidden_states, kv_states, mask, perform_mask,
                         *, heads, head_dim, ln_kv):
    B, L, D = hidden_states.shape
    inner = heads * head_dim
    if inner != D:
        # The PyTorch module applies Conv2d(inner, inner, 1) to a dim-channel
        # tensor, so it already requires inner == dim.
        raise ValueError("heads * head_dim must equal dim (as in the module)")
    Lk, Dkv = kv_states.shape[1], kv_states.shape[2]

    # ---- pad key axis to a multiple of 128 (lane-dense mask/score tiles) ----
    Lk_pad = ((Lk + 127) // 128) * 128
    mask = mask.astype(jnp.float32)
    if Lk_pad != Lk:
        kv_states = jnp.pad(kv_states, ((0, 0), (0, Lk_pad - Lk), (0, 0)))
        mask = jnp.pad(mask, ((0, 0), (0, 0), (0, Lk_pad - Lk)),
                       constant_values=_NEG_BIG)
    mask = mask.astype(jnp.bfloat16)                 # narrow the big HBM stream
    perform_mask = perform_mask.astype(jnp.int32)

    # ---- host-side weight prep (stacked KV weights, fused Wo @ conv) ----
    scale = 1.0 / float(head_dim) ** 0.5
    gamma = params["ln_gamma"].reshape(1, D).astype(jnp.float32)
    beta = params["ln_beta"].reshape(1, D).astype(jnp.float32)
    wq_b = params["wq"].astype(jnp.bfloat16)                         # (D, inner)
    wkv_b = jnp.concatenate([params["wk"], params["wv"]],
                            axis=1).astype(jnp.bfloat16)             # (Dkv, 2*inner)
    w_fused = (params["wo"] @ params["conv_w"]).astype(jnp.bfloat16)  # (inner, D)
    b_fused = (params["bo"] @ params["conv_w"]
               + params["conv_b"]).astype(jnp.float32).reshape(1, D)

    # ---- projections: LN + one wide matmul each, once per token ----
    q2d = _project(hidden_states.reshape(B * L, D), gamma, beta, wq_b,
                   apply_ln=True, scale=scale)
    if ln_kv:
        kv2d = _project(kv_states.reshape(B * Lk_pad, Dkv), gamma, beta,
                        wkv_b, apply_ln=True, scale=1.0)
    else:
        kv2d = _project(kv_states.reshape(B * Lk_pad, Dkv),
                        jnp.ones((1, Dkv), jnp.float32),
                        jnp.zeros((1, Dkv), jnp.float32),
                        wkv_b, apply_ln=False, scale=1.0)

    # head-major layouts: attention kernel never lane-slices activations
    q_heads = q2d.reshape(B, L, heads, head_dim).transpose(0, 2, 1, 3)
    kv_heads = (kv2d.reshape(B, Lk_pad, 2, heads, head_dim)
                .transpose(0, 2, 3, 1, 4)
                .reshape(B, 2 * heads, Lk_pad, head_dim))

    # ---- tiling ----
    TQ = _pick_q_tile(L, cap=256)
    if B == 1 and (L // TQ) < 2:                     # keep both v7x cores busy
        smaller = _pick_q_tile(L, cap=max(8, TQ // 2))
        if smaller < TQ:
            TQ = smaller
    TK = _pick_kv_tile(Lk_pad, cap=1024)
    grid = (B, L // TQ, Lk_pad // TK)

    hsz = jnp.dtype(hidden_states.dtype).itemsize
    blk_bytes = (2 * (heads * TQ * head_dim * 2          # q block
                      + 2 * heads * TK * head_dim * 2    # kv block
                      + TQ * TK * 2                      # mask block (bf16)
                      + 2 * TQ * D * hsz)                # hidden + out blocks
                 + 2 * (inner * D * 2 + D * 4)           # resident weights
                 + heads * TQ * (head_dim + 2) * 4       # softmax scratch
                 + 3 * TQ * TK * 4)                      # s/p f32 temporaries

    kernel = functools.partial(_attn_kernel, heads=heads, head_dim=head_dim)

    return pl.pallas_call(
        kernel,
        out_shape=jax.ShapeDtypeStruct((B, L, D), hidden_states.dtype),
        grid_spec=pltpu.PrefetchScalarGridSpec(
            num_scalar_prefetch=1,                   # perform_mask -> SMEM
            grid=grid,
            in_specs=[
                # gated batches pin q/kv/mask to block 0 -> dedup kills the DMA
                pl.BlockSpec((1, heads, TQ, head_dim),
                             lambda b, q, k, pm: (b * pm[b], 0, q * pm[b], 0)),
                pl.BlockSpec((1, 2 * heads, TK, head_dim),
                             lambda b, q, k, pm: (b * pm[b], 0, k * pm[b], 0)),
                pl.BlockSpec((1, TQ, TK),
                             lambda b, q, k, pm: (b * pm[b], q * pm[b],
                                                  k * pm[b])),
                pl.BlockSpec((1, TQ, D), lambda b, q, k, pm: (b, q, 0)),
                pl.BlockSpec((inner, D), lambda b, q, k, pm: (0, 0)),
                pl.BlockSpec((1, D), lambda b, q, k, pm: (0, 0)),
            ],
            out_specs=pl.BlockSpec((1, TQ, D), lambda b, q, k, pm: (b, q, 0)),
            scratch_shapes=[
                pltpu.VMEM((heads, TQ, 1), jnp.float32),         # running max
                pltpu.VMEM((heads, TQ, 1), jnp.float32),         # running denom
                pltpu.VMEM((heads, TQ, head_dim), jnp.float32),  # accumulator
            ]),
        compiler_params=pltpu.CompilerParams(
            dimension_semantics=("parallel", "parallel", "arbitrary"),
            vmem_limit_bytes=_vmem_limit(blk_bytes)),
    )(perform_mask, q_heads, kv_heads, mask, hidden_states, w_fused, b_fused)


# ------------------------------------------------------------------
# Python wrappers (mask downsampling, perform_mask, kernel dispatch)
# ------------------------------------------------------------------
def attn_copy_forward(params, hidden_states, timestep=None,
                      self_attention_masks=None, *, heads, head_dim, **kwargs):
    # timestep unused (layer_norm path, num_embeds_ada_norm=None)
    del timestep, kwargs
    B, L, D = hidden_states.shape
    mask = self_attention_masks
    # matches torch: (mask.float().mean([1,2]) != 1)
    perform_mask = (jnp.mean(mask.astype(jnp.float32), axis=(1, 2)) != 1.0
                    ).astype(jnp.int32)
    b, w_h, _ = mask.shape
    if w_h != L:  # strided spatial downsample of the (b, w*h, w*h) mask
        scale = int((w_h // L) ** 0.5)
        w = int(w_h ** 0.5)
        mask = mask.reshape(b, w, w, w, w)[:, ::scale, ::scale, ::scale, ::scale]
        mask = mask.reshape(b, L, L)
    return _run_fused_attention(params, hidden_states, hidden_states, mask,
                                perform_mask, heads=heads, head_dim=head_dim,
                                ln_kv=True)


def cross_attn_copy_forward(params, hidden_states, encoder_hidden_states=None,
                            encoder_attention_mask=None, timestep=None,
                            cross_attention_mask=None,
                            layout_hidden_states=None, *, heads, head_dim,
                            **kwargs):
    del timestep, kwargs
    B, L, D = hidden_states.shape
    mask = (encoder_attention_mask if cross_attention_mask is None
            else cross_attention_mask)
    perform_mask = (jnp.mean(mask.astype(jnp.float32), axis=(1, 2)) != 1.0
                    ).astype(jnp.int32)
    enc = (encoder_hidden_states if layout_hidden_states is None
           else layout_hidden_states)
    b, w_h, l = mask.shape
    if w_h != L:  # strided spatial downsample of the (b, w*h, l_enc) mask
        scale = int((w_h // L) ** 0.5)
        w = int(w_h ** 0.5)
        mask = mask.reshape(b, w, w, l)[:, ::scale, ::scale, :].reshape(b, -1, l)
    return _run_fused_attention(params, hidden_states, enc, mask, perform_mask,
                                heads=heads, head_dim=head_dim, ln_kv=False)


# ------------------------------------------------------------------
# Deterministic parameter construction (mirrors the PyTorch __init__)
# ------------------------------------------------------------------
def _init_attn_params(key, dim, heads, head_dim, cross_dim=None):
    inner = heads * head_dim
    kdim = dim if cross_dim is None else cross_dim
    ks = jax.random.split(key, 4)
    s = 0.02
    return {
        "ln_gamma": jnp.ones((1, dim), jnp.float32),
        "ln_beta": jnp.zeros((1, dim), jnp.float32),
        "wq": s * jax.random.normal(ks[0], (dim, inner), jnp.float32),
        "wk": s * jax.random.normal(ks[1], (kdim, inner), jnp.float32),
        "wv": s * jax.random.normal(ks[2], (kdim, inner), jnp.float32),
        "wo": s * jax.random.normal(ks[3], (inner, dim), jnp.float32),
        "bo": jnp.zeros((1, dim), jnp.float32),
        # zero_module(nn.Conv2d(inner, inner, 1)): weight & bias are zero.
        "conv_w": jnp.zeros((inner, inner), jnp.float32),  # stored (in, out)
        "conv_b": jnp.zeros((1, inner), jnp.float32),
    }


class CSLayoutInjectionLayersPallas:
    """JAX/Pallas re-implementation of CSLayoutInjectionLayers."""

    def __init__(self, key, num_layers=2, dim=32, heads=2, head_dim=16,
                 cross_dim=48, hid_proj_in=40, add_self_att=True):
        self.heads, self.head_dim = heads, head_dim
        self.add_self_att = add_self_att
        k_proj, k_layers = jax.random.split(key)
        kw, kb = jax.random.split(k_proj)
        self.encoder_hid_proj = {
            "w": 0.02 * jax.random.normal(kw, (hid_proj_in, cross_dim),
                                          jnp.float32),
            "b": 0.01 * jax.random.normal(kb, (cross_dim,), jnp.float32),
        }
        self.self_params, self.cross_params = [], []
        lkeys = jax.random.split(k_layers, num_layers * 2)
        for i in range(num_layers):
            self.self_params.append(
                _init_attn_params(lkeys[2 * i], dim, heads, head_dim))
            self.cross_params.append(
                _init_attn_params(lkeys[2 * i + 1], dim, heads, head_dim,
                                  cross_dim=cross_dim))

    def __call__(self, encoder_hidden_states=None, cross_attention_masks=None,
                 self_attention_masks=None):
        if encoder_hidden_states is not None and self.encoder_hid_proj is not None:
            B, Le, Din = encoder_hidden_states.shape
            proj = linear_pallas(encoder_hidden_states.reshape(B * Le, Din),
                                 self.encoder_hid_proj["w"],
                                 self.encoder_hid_proj["b"])
            encoder_hidden_states = proj.reshape(B, Le, -1)
        attn_outputs = []
        for sp, cp in zip(self.self_params, self.cross_params):
            self_layer = functools.partial(attn_copy_forward, sp,
                                           heads=self.heads,
                                           head_dim=self.head_dim)
            cross_layer = functools.partial(cross_attn_copy_forward, cp,
                                            heads=self.heads,
                                            head_dim=self.head_dim)
            attn_outputs.append({
                "self_layer": self_layer,
                "cross_layer": cross_layer,
                "x": {"layout_hidden_states": encoder_hidden_states,
                      "cross_attention_mask": cross_attention_masks,
                      "self_attention_masks": self_attention_masks},
            })
        return {"attn": attn_outputs}


# ------------------------------------------------------------------
# Pure-JAX reference (kernel validation only)
# ------------------------------------------------------------------
def _ref_attn_copy(p, hs, mask, heads, head_dim, enc=None):
    pm = (jnp.mean(mask.astype(jnp.float32), axis=(1, 2)) != 1.0
          ).astype(jnp.float32)
    mu = jnp.mean(hs, -1, keepdims=True)
    var = jnp.mean(jnp.square(hs - mu), -1, keepdims=True)
    nh = (hs - mu) / jnp.sqrt(var + _EPS) * p["ln_gamma"][0] + p["ln_beta"][0]
    kv = nh if enc is None else enc
    q, k, v = nh @ p["wq"], kv @ p["wk"], kv @ p["wv"]
    B, L, I = q.shape
    Lk = k.shape[1]
    qh = q.reshape(B, L, heads, head_dim).transpose(0, 2, 1, 3)
    kh = k.reshape(B, Lk, heads, head_dim).transpose(0, 2, 1, 3)
    vh = v.reshape(B, Lk, heads, head_dim).transpose(0, 2, 1, 3)
    s = jnp.einsum("bhqd,bhkd->bhqk", qh, kh) / jnp.sqrt(float(head_dim))
    s = s + mask[:, None]
    pr = jax.nn.softmax(s, -1)
    ctx = jnp.einsum("bhqk,bhkd->bhqd", pr, vh).transpose(0, 2, 1, 3)
    ctx = ctx.reshape(B, L, I)
    ao = ctx @ p["wo"] + p["bo"][0]
    co = ao @ p["conv_w"] + p["conv_b"][0]
    return hs + co * pm[:, None, None]


# ------------------------------------------------------------------
if __name__ == "__main__":
    key = jax.random.PRNGKey(0)
    B, L, D = 2, 64, 32          # L = 8*8 spatial tokens
    heads, head_dim = 2, 16      # inner_dim = 32 == dim
    Le, Dc, Din = 8, 48, 40      # encoder seq / cross dim / hid_proj in

    kh, ke = jax.random.split(key)
    hidden_states = jax.random.normal(kh, (B, L, D), jnp.float32)
    encoder_hidden_states = jax.random.normal(ke, (B, Le, Din), jnp.float32)
    # additive attention-bias masks; batch 1 is all-ones -> perform_mask = 0
    self_mask = jnp.concatenate(
        [jnp.zeros((1, L, L), jnp.float32), jnp.ones((1, L, L), jnp.float32)], 0)
    cross_mask = jnp.concatenate(
        [jnp.zeros((1, L, Le), jnp.float32), jnp.ones((1, L, Le), jnp.float32)], 0)

    model = CSLayoutInjectionLayersPallas(jax.random.PRNGKey(42), num_layers=2,
                                          dim=D, heads=heads, head_dim=head_dim,
                                          cross_dim=Dc, hid_proj_in=Din)

    # --- validate the Pallas linear kernel (bf16 matmul, f32 accumulate) ---
    proj = linear_pallas(encoder_hidden_states.reshape(B * Le, Din),
                         model.encoder_hid_proj["w"],
                         model.encoder_hid_proj["b"])
    proj_ref = (encoder_hidden_states.reshape(B * Le, Din)
                @ model.encoder_hid_proj["w"] + model.encoder_hid_proj["b"])
    assert jnp.allclose(proj, proj_ref, atol=1e-2, rtol=1e-2)

    # --- validate the attention kernels (nonzero conv params so the full
    #     fused path is exercised; the module itself uses zero-init conv) ---
    kc = jax.random.PRNGKey(7)
    test_self = dict(model.self_params[0])
    test_self["conv_w"] = 0.02 * jax.random.normal(kc, (D, D), jnp.float32)
    test_self["conv_b"] = jnp.full((1, D), 0.01, jnp.float32)
    out_self = attn_copy_forward(test_self, hidden_states,
                                 self_attention_masks=self_mask,
                                 heads=heads, head_dim=head_dim)
    ref_self = _ref_attn_copy(test_self, hidden_states, self_mask, heads, head_dim)
    assert jnp.allclose(out_self, ref_self, atol=1e-2, rtol=1e-2)

    test_cross = dict(model.cross_params[0])
    test_cross["conv_w"] = 0.02 * jax.random.normal(kc, (D, D), jnp.float32)
    test_cross["conv_b"] = jnp.full((1, D), 0.01, jnp.float32)
    enc_proj = proj.reshape(B, Le, Dc)
    out_cross = cross_attn_copy_forward(test_cross, hidden_states,
                                        encoder_attention_mask=cross_mask,
                                        layout_hidden_states=enc_proj,
                                        heads=heads, head_dim=head_dim)
    ref_cross = _ref_attn_copy(test_cross, hidden_states, cross_mask,
                               heads, head_dim, enc=enc_proj)
    assert jnp.allclose(out_cross, ref_cross, atol=1e-2, rtol=1e-2)

    # --- run the module forward exactly as in PyTorch ---
    out = model(encoder_hidden_states=encoder_hidden_states,
                cross_attention_masks=cross_mask,
                self_attention_masks=self_mask)
    layer0 = out["attn"][0]
    x = layer0["x"]
    hs1 = layer0["self_layer"](hidden_states,
                               self_attention_masks=x["self_attention_masks"])
    hs2 = layer0["cross_layer"](hs1,
                                encoder_hidden_states=None,
                                encoder_attention_mask=None,
                                cross_attention_mask=x["cross_attention_mask"],
                                layout_hidden_states=x["layout_hidden_states"])
    jax.block_until_ready((hs1, hs2, x["layout_hidden_states"]))
    print("KERNEL_OK")
</pallas_src>

<mosaic_0001>
module attributes {stable_mosaic.version = 11 : i64} {
  func.func @_linear_kernel(%arg0: i32, %arg1: memref<16x40xf32, #tpu.memory_space<vmem>>, %arg2: memref<40x48xbf16, #tpu.memory_space<vmem>>, %arg3: memref<1x48xf32, #tpu.memory_space<vmem>>, %arg4: memref<16x48xf32, #tpu.memory_space<vmem>>) attributes {dimension_semantics = [#tpu.dimension_semantics<parallel>], iteration_bounds = array<i64: 1>, scalar_prefetch = 0 : i64, scratch_operands = 0 : i64, tpu.core_type = #tpu.core_type<tc>, window_params = [{transform_indices = @transform_0, window_bounds = array<i64: 16, 40>}, {pipeline_mode = #tpu.pipeline_mode<synchronous>, transform_indices = @transform_1, window_bounds = array<i64: 40, 48>}, {pipeline_mode = #tpu.pipeline_mode<synchronous>, transform_indices = @transform_2, window_bounds = array<i64: 1, 48>}, {transform_indices = @transform_3, window_bounds = array<i64: 16, 48>}]} {
    %c0 = arith.constant 0 : index
    %c0_0 = arith.constant 0 : index
    %0 = vector.load %arg1[%c0, %c0_0] : memref<16x40xf32, #tpu.memory_space<vmem>>, vector<16x40xf32>
    %1 = arith.truncf %0 : vector<16x40xf32> to vector<16x40xbf16>
    %c0_1 = arith.constant 0 : index
    %c0_2 = arith.constant 0 : index
    %2 = vector.load %arg2[%c0_1, %c0_2] : memref<40x48xbf16, #tpu.memory_space<vmem>>, vector<40x48xbf16>
    %cst = arith.constant dense<0.000000e+00> : vector<16x48xf32>
    %3 = tpu.matmul %1, %2, %cst {dimension_numbers = #tpu.dot_dimension_numbers<[1], [0], [0], [1], [0, 0, 1, 1], [], []>} : vector<16x40xbf16>, vector<40x48xbf16>, vector<16x48xf32> -> vector<16x48xf32>
    %c0_3 = arith.constant 0 : index
    %c0_4 = arith.constant 0 : index
    %4 = vector.load %arg3[%c0_3, %c0_4] : memref<1x48xf32, #tpu.memory_space<vmem>>, vector<1x48xf32>
    %5 = vector.broadcast %4 : vector<1x48xf32> to vector<16x48xf32>
    %6 = arith.addf %3, %5 : vector<16x48xf32>
    %c0_5 = arith.constant 0 : index
    %c0_6 = arith.constant 0 : index
    %7 = vector.load %arg4[%c0_5, %c0_6] : memref<16x48xf32, #tpu.memory_space<vmem>>, vector<16x48xf32>
    tpu.vector_store %arg4[%c0_5, %c0_6], %6 {strides = array<i32>} : memref<16x48xf32, #tpu.memory_space<vmem>>, vector<16x48xf32>,
    return
  }
  func.func @transform_0(%arg0: i32) -> (i32, i32) {
    %c0_i32 = arith.constant 0 : i32
    %c0_i32_0 = arith.constant 0 : i32
    return %arg0, %c0_i32 : i32, i32
  }
  func.func @transform_1(%arg0: i32) -> (i32, i32) {
    %c0_i32 = arith.constant 0 : i32
    %c0_i32_0 = arith.constant 0 : i32
    %c0_i32_1 = arith.constant 0 : i32
    return %c0_i32, %c0_i32_0 : i32, i32
  }
  func.func @transform_2(%arg0: i32) -> (i32, i32) {
    %c0_i32 = arith.constant 0 : i32
    %c0_i32_0 = arith.constant 0 : i32
    %c0_i32_1 = arith.constant 0 : i32
    return %c0_i32, %c0_i32_0 : i32, i32
  }
  func.func @transform_3(%arg0: i32) -> (i32, i32) {
    %c0_i32 = arith.constant 0 : i32
    %c0_i32_0 = arith.constant 0 : i32
    return %arg0, %c0_i32 : i32, i32
  }
}

</mosaic_0001>

<bundles_post_ra>
// kernel: tpu_custom_call.1
= control target key start
LH: loop header
LB: loop body
LE: loop exit
PB: predicated region body
PF: predicated region fallthrough
CT: control target
= control target key end

     0   :  { %8 = vsyncpa [#allocation3], 0  ;;  %s321_s0 = inlined_call_operand.hbm [shape: f32[16,40], index: 0, kind: input, shape index: {}]   ;;  %s322_s1 = inlined_call_operand.hbm [shape: bf16[40,48], index: 1, kind: input, shape index: {}]   ;;  %s323_s2 = inlined_call_operand.vmem [shape: f32[1,48], index: 2, kind: input, shape index: {}]   ;;  %s324_s3 = inlined_call_operand.hbm [shape: f32[16,48], index: 3, kind: output, shape index: {}]  }
   0x1   :  { %9 = vsyncpa [#allocation6], 0 }
   0x2   :  { %10 = vsyncpa [#allocation4], 0  ;;  %s247_s12 = smov [#allocation2]   ;;  %s175_s16 = scalar_lea.hbm %s321_s0, 256 }
   0x3   :  { %s16_s13 = sshll.u32 %s247_s12, 4  ;;  %p176_p0 = scmp.ne.s32.totalorder %s321_s0, %s175_s16  ;;  %s17_s13 = int_to_ptr.vmem [resolvable:$true] %s16_s13 }
   0x4   :  { %p179_p1 = scmp.lt.u32.totalorder %s175_s16, %s321_s0 }
   0x6   :  { %p181_p2 = pnand %p179_p1, %p176_p0 }
   0x8   :  { %184 = shalt.err (!%p181_p2)
}
   0x9   :  { %s185_s21 = scalar_lea.vmem %s17_s13, 256  ;;  %p190_p4 = scmp.lt.s32.totalorder %s17_s13, %s17_s13 }
   0xa   :  { %p186_p3 = scmp.ne.s32.totalorder %s17_s13, %s185_s21  ;;  %p191_p5 = scmp.lt.s32.totalorder %s185_s21, %s185_s21 }
   0xc   :  { %p192_p6 = por %p191_p5, %p190_p4 }
   0xe   :  { %p193_p7 = pnand %p192_p6, %p186_p3 }
  0x10   :  { %196 = shalt.err (!%p193_p7)
}
  0x11   :  { %s248_s22 = smov 128   ;;  %s249_s23 = smov 8  }
  0x12   :  { %22 = dma.hbm_to_vmem [thread:$0]  %s321_s0, 256, %s17_s13, [#allocation3], %s248_s22, %s248_s22, %s249_s23  }
  0x13   :  { %s250_s26 = smov [#allocation5]   ;;  %s197_s30 = scalar_lea.hbm %s322_s1, 320 }
  0x14   :  { %s28_s27 = sshll.u32 %s250_s26, 4  ;;  %p198_p8 = scmp.ne.s32.totalorder %s322_s1, %s197_s30  ;;  %s29_s27 = int_to_ptr.vmem [resolvable:$true] %s28_s27 }
  0x15   :  { %p201_p9 = scmp.lt.u32.totalorder %s197_s30, %s322_s1 }
  0x17   :  { %p203_p10 = pnand %p201_p9, %p198_p8 }
  0x19   :  { %206 = shalt.err (!%p203_p10)
}
  0x1a   :  { %s207_s8 = scalar_lea.vmem %s29_s27, 320  ;;  %p212_p12 = scmp.lt.s32.totalorder %s29_s27, %s29_s27 }
  0x1b   :  { %p208_p11 = scmp.ne.s32.totalorder %s29_s27, %s207_s8  ;;  %p213_p13 = scmp.lt.s32.totalorder %s207_s8, %s207_s8 }
  0x1d   :  { %p214_p0 = por %p213_p13, %p212_p12 }
  0x1f   :  { %p215_p1 = pnand %p214_p0, %p208_p11 }
  0x21   :  { %218 = shalt.err (!%p215_p1)
}
  0x22   :  { %s251_s0 = smov 64   ;;  %s252_s9 = smov 4  }
  0x23   :  { %34 = dma.hbm_to_vmem [thread:$0]  %s322_s1, 320, %s29_s27, [#allocation6], %s251_s0, %s251_s0, %s252_s9  }
  0x24   :  { %241 = dma.done.wait [#allocation3], 256  }
  0x25   :  { %242 = vsyncadd [#allocation3], 4294967040 }
  0x26   :  { %243 = dma.done.wait [#allocation6], 320  }
  0x27   :  { %244 = vsyncadd [#allocation6], 4294966976  ;;  %v253_v0 = vmov 0.0   ;;  %vm254_vm0 = vmmov 0   ;;  %v172_v1 = vld [vmem:[#allocation5] sm:$0xff]   ;;  %v173_v2 = vld [vmem:[#allocation5 + $0x8] sm:$0xff]  }
  0x28   :  { %153 = vmatprep.subr.bf16.mxu0 %v253_v0  ;;  %159 = vmatprep.mubr.msk.bf16.mxu0 %vm254_vm0, %v253_v0  ;;  %v174_v3 = vld [vmem:[#allocation5 + $0x10] ss:$0 sps:$4 sm:$0xff]   ;;  %vm78_vm1 = vcmask 1043456   ;;  %v45_v5 = vld [vmem:[#allocation2 + $0x8] sm:$0xff]  ;;  %vm74_vm2 = vcmask 326656   ;;  %vm123_vm3 = vcmask 392192  }
  0x29   :  { %154 = vmatpush3.bf16.msra.mxu0 %v172_v1  ;;  %v44_v4 = vld [vmem:[#allocation2] sm:$0xff]  ;;  %v80_v6 = vsel %vm78_vm1, %v174_v3, 0  ;;  %s255_s13 = smov [#allocation7]  }
  0x2a   :  { %155 = vmatprep.subr.bf16.mxu0 %v253_v0  ;;  %v46_v7 = vpack.c.bf16 %v45_v5, %v44_v4  ;;  %v144_v8 = vld [vmem:[%s323_s2] ss:$0 sm:$0xff]  ;;  %s131_s14 = sshll.u32 %s255_s13, 4  ;;  %s132_s14 = int_to_ptr.vmem [resolvable:$true] %s131_s14 }
  0x2b   :  { %s219_s15 = scalar_lea.vmem %s132_s14, 256  ;;  %p224_p3 = scmp.lt.s32.totalorder %s132_s14, %s132_s14 }
  0x2c   :  { %p220_p2 = scmp.ne.s32.totalorder %s132_s14, %s219_s15  ;;  %p225_p4 = scmp.lt.s32.totalorder %s219_s15, %s219_s15 }
  0x2d   :  { %156 = vmatpush3.bf16.msra.mxu0 %v173_v2 }
  0x2e   :  { %157 = vmatprep.subr.bf16.mxu0 %v253_v0  ;;  %p226_p5 = por %p225_p4, %p224_p3 }
  0x30   :  { %p227_p6 = pnand %p226_p5, %p220_p2 }
  0x31   :  { %158 = vmatpush3.bf16.msra.mxu0 %v80_v6 }
  0x34   :  { %160 = vmatmul.mubr.msk.bf16.vlgmr.msra.gmra.mrb[0].mxu0 %vm74_vm2, %v46_v7 }
 0x107   :  { %v116_v9 = vpop.f32.mrb[0].mxu0 }
 0x108   :  { %v117_v10 = vadd.f32 %v144_v8, %v116_v9  ;;  %v161_v11 = vpop.f32.mrb[1].mxu0 }
 0x109   :  { %v119_v12 = vpop.f32.mrb[2].mxu0 }
 0x10a   :  { %v120_v13 = vadd.f32 %v144_v8, %v119_v12  ;;  %v162_v14 = vpop.f32.mrb[3].mxu0  ;;  %124 = vst.msk [vmem:[#allocation7] sm:$0xff] %vm123_vm3, %v117_v10 }
 0x10c   :  { %125 = vst.msk [vmem:[#allocation7 + $0x8] sm:$0xff] %vm123_vm3, %v120_v13 }
 0x10d   :  { %230 = shalt.err (!%p227_p6)
}
 0x10e   :  { %s231_s17 = scalar_lea.hbm %s324_s3, 256 }
 0x10f   :  { %p232_p7 = scmp.ne.s32.totalorder %s324_s3, %s231_s17  ;;  %p235_p8 = scmp.lt.u32.totalorder %s231_s17, %s324_s3 }
 0x111   :  { %p237_p9 = pnand %p235_p8, %p232_p7 }
 0x113   :  { %240 = shalt.err (!%p237_p9)
}
 0x114   :  { %137 = dma.vmem_to_hbm [thread:$0]  %s132_s14, 256, %s324_s3, [#allocation4], %s248_s22, %s248_s22, %s249_s23  }
 0x115   :  { %245 = dma.done.wait [#allocation4], 256  }
 0x116   :  { %246 = vsyncadd [#allocation4], 4294967040 }
 0x117   :  { %141 = vsyncpa [#allocation3], 1 }
 0x118   :  { %142 = vsyncpa [#allocation6], 1 }
 0x119   :  { %143 = vsyncpa [#allocation4], 1 }

</bundles_post_ra>
